<compile_context>
chip_gen: v7x
topology: tpu7x:2x2x1
jax: 0.10.0
libtpu: 0.0.40
codegen_flags: <defaults>
</compile_context>

<pallas_src>
import jax
import jax.numpy as jnp
from jax.experimental import pallas as pl
from jax.experimental.pallas import tpu as pltpu


def _round_up(x, m):
    return ((x + m - 1) // m) * m


# ---------------------------------------------------------------------------
# Fused MLP kernel: one row-tile of x -> fc1 -> GELU -> fc2 -> one row-tile of out.
# x / W1 / W2 are bf16 (MXU-native); accumulation, bias add and GELU are f32.
# Weights/biases are whole-array VMEM-resident (constant index_map).
# ---------------------------------------------------------------------------
def mlp_kernel(x_ref, w1_ref, b1_ref, w2_ref, b2_ref, o_ref):
    h = (
        jnp.dot(x_ref[...], w1_ref[...], preferred_element_type=jnp.float32)
        + b1_ref[...]
    )
    h = jax.nn.gelu(h, approximate=True)
    o_ref[...] = (
        jnp.dot(h.astype(w2_ref.dtype), w2_ref[...],
                preferred_element_type=jnp.float32)
        + b2_ref[...]
    ).astype(o_ref.dtype)


def prepare_mlp_params(w1, b1, w2, b2):
    """One-time param prep (hoisted out of the per-call path): bf16 weights,
    f32 biases reshaped to (1, C) for in-kernel broadcast."""
    return (
        w1.astype(jnp.bfloat16),
        b1.astype(jnp.float32).reshape(1, -1),
        w2.astype(jnp.bfloat16),
        b2.astype(jnp.float32).reshape(1, -1),
    )


def _vmem_cap_bytes():
    # ~3/4 of physical VMEM: ~96 MiB on v5e/v6e (128 MiB), ~48 MiB on v7x (64 MiB).
    try:
        phys = int(pltpu.get_tpu_info().vmem_capacity_bytes)
    except Exception:
        phys = 64 << 20
    return (phys * 3) // 4


def mlp_forward(x, w1_bf16, b1_f32, w2_bf16, b2_f32, *, tile_rows=1024):
    """x: [..., C_in]; w1: [C_in, C_hid] bf16; w2: [C_hid, C_out] bf16;
    b*: [1, C_*] f32 (use prepare_mlp_params)."""
    orig_shape = x.shape
    c_in = orig_shape[-1]
    c_hid = w1_bf16.shape[1]
    c_out = w2_bf16.shape[1]

    x2 = x.reshape(-1, c_in).astype(jnp.bfloat16)
    n = x2.shape[0]

    # Row tile: multiple of 8, no larger than the (rounded-up) row count, and
    # capped so there are >= 2 grid steps when there is enough work (keeps both
    # TensorCores busy on v7x under dimension_semantics=("parallel",)).
    tile_rows = min(tile_rows, _round_up(n, 8))
    if n >= 16:
        tile_rows = min(tile_rows, max(8, _round_up(pl.cdiv(n, 2), 8)))
    grid_steps = pl.cdiv(n, tile_rows)

    # Real per-buffer VMEM sum: streamed x/out tiles double-buffered, resident
    # weights/biases counted once, plus the f32 intermediate h (+ its bf16 copy).
    vmem_bytes = (
        2 * (2 * tile_rows * c_in)            # x tile (bf16), double-buffered
        + 2 * (4 * tile_rows * c_out)         # out tile (f32), double-buffered
        + 2 * (c_in * c_hid + c_hid * c_out)  # resident bf16 weights
        + 4 * (c_hid + c_out)                 # resident f32 biases
        + (4 + 2) * tile_rows * c_hid         # h (f32) + bf16 copy for 2nd dot
    )
    vmem_limit = int(min(max(int(1.25 * vmem_bytes) + (2 << 20), 16 << 20),
                         _vmem_cap_bytes()))

    cost = pl.CostEstimate(
        flops=2 * n * (c_in * c_hid + c_hid * c_out),
        transcendentals=n * c_hid,  # tanh per hidden activation
        bytes_accessed=(
            2 * n * c_in                       # x (bf16)
            + 2 * (c_in * c_hid + c_hid * c_out)  # weights (bf16)
            + 4 * (c_hid + c_out)              # biases (f32)
            + 4 * n * c_out                    # output (f32)
        ),
    )

    out = pl.pallas_call(
        mlp_kernel,
        out_shape=jax.ShapeDtypeStruct((n, c_out), jnp.float32),
        grid_spec=pltpu.PrefetchScalarGridSpec(
            num_scalar_prefetch=0,
            grid=(grid_steps,),
            in_specs=[
                pl.BlockSpec((tile_rows, c_in), lambda i: (i, 0)),   # x tile
                pl.BlockSpec((c_in, c_hid), lambda i: (0, 0)),       # W1 (resident)
                pl.BlockSpec((1, c_hid), lambda i: (0, 0)),          # b1
                pl.BlockSpec((c_hid, c_out), lambda i: (0, 0)),      # W2 (resident)
                pl.BlockSpec((1, c_out), lambda i: (0, 0)),          # b2
            ],
            out_specs=pl.BlockSpec((tile_rows, c_out), lambda i: (i, 0)),
        ),
        compiler_params=pltpu.CompilerParams(
            dimension_semantics=("parallel",),
            vmem_limit_bytes=vmem_limit,
        ),
        cost_estimate=cost,
    )(x2, w1_bf16, b1_f32, w2_bf16, b2_f32)

    return out.reshape(*orig_shape[:-1], c_out)


if __name__ == "__main__":
    # Small shapes consistent with the module: tokens = batch * seq point features.
    BATCH, SEQ = 2, 8
    C_IN, C_HID, C_OUT = 32, 64, 32

    key = jax.random.PRNGKey(0)
    k1, k2, k3, k4, k5 = jax.random.split(key, 5)

    # nn.Linear-style init, weights stored pre-transposed as [fan_in, fan_out].
    lim1 = 1.0 / jnp.sqrt(C_IN)
    lim2 = 1.0 / jnp.sqrt(C_HID)
    w1 = jax.random.uniform(k1, (C_IN, C_HID), jnp.float32, -lim1, lim1)
    b1 = jax.random.uniform(k2, (C_HID,), jnp.float32, -lim1, lim1)
    w2 = jax.random.uniform(k3, (C_HID, C_OUT), jnp.float32, -lim2, lim2)
    b2 = jax.random.uniform(k4, (C_OUT,), jnp.float32, -lim2, lim2)

    x = jax.random.normal(k5, (BATCH, SEQ, C_IN), jnp.float32)

    params = prepare_mlp_params(w1, b1, w2, b2)  # hoisted, one-time prep
    out = mlp_forward(x, *params)
    out = jax.block_until_ready(out)

    # Pure-JAX f32 reference (same tanh-GELU formula). Kernel matmuls run in
    # bf16 with f32 accumulation, so tolerances are relaxed accordingly.
    h_ref = jax.nn.gelu(x @ w1 + b1, approximate=True)
    ref = h_ref @ w2 + b2

    assert out.shape == (BATCH, SEQ, C_OUT)
    assert jnp.allclose(out, ref, atol=5e-2, rtol=5e-2), "mismatch vs reference"

    print("KERNEL_OK")
</pallas_src>

<mosaic_0001>
module attributes {stable_mosaic.version = 11 : i64} {
  func.func @mlp_kernel(%arg0: i32, %arg1: memref<8x32xbf16, #tpu.memory_space<vmem>>, %arg2: memref<32x64xbf16, #tpu.memory_space<vmem>>, %arg3: memref<1x64xf32, #tpu.memory_space<vmem>>, %arg4: memref<64x32xbf16, #tpu.memory_space<vmem>>, %arg5: memref<1x32xf32, #tpu.memory_space<vmem>>, %arg6: memref<8x32xf32, #tpu.memory_space<vmem>>) attributes {dimension_semantics = [#tpu.dimension_semantics<parallel>], iteration_bounds = array<i64: 2>, scalar_prefetch = 0 : i64, scratch_operands = 0 : i64, tpu.core_type = #tpu.core_type<tc>, window_params = [{transform_indices = @transform_0, window_bounds = array<i64: 8, 32>}, {pipeline_mode = #tpu.pipeline_mode<synchronous>, transform_indices = @transform_1, window_bounds = array<i64: 32, 64>}, {pipeline_mode = #tpu.pipeline_mode<synchronous>, transform_indices = @transform_2, window_bounds = array<i64: 1, 64>}, {pipeline_mode = #tpu.pipeline_mode<synchronous>, transform_indices = @transform_3, window_bounds = array<i64: 64, 32>}, {pipeline_mode = #tpu.pipeline_mode<synchronous>, transform_indices = @transform_4, window_bounds = array<i64: 1, 32>}, {transform_indices = @transform_5, window_bounds = array<i64: 8, 32>}]} {
    %c0 = arith.constant 0 : index
    %c0_0 = arith.constant 0 : index
    %0 = vector.load %arg1[%c0, %c0_0] : memref<8x32xbf16, #tpu.memory_space<vmem>>, vector<8x32xbf16>
    %c0_1 = arith.constant 0 : index
    %c0_2 = arith.constant 0 : index
    %1 = vector.load %arg2[%c0_1, %c0_2] : memref<32x64xbf16, #tpu.memory_space<vmem>>, vector<32x64xbf16>
    %cst = arith.constant dense<0.000000e+00> : vector<8x64xf32>
    %2 = tpu.matmul %0, %1, %cst {dimension_numbers = #tpu.dot_dimension_numbers<[1], [0], [0], [1], [0, 0, 1, 1], [], []>} : vector<8x32xbf16>, vector<32x64xbf16>, vector<8x64xf32> -> vector<8x64xf32>
    %c0_3 = arith.constant 0 : index
    %c0_4 = arith.constant 0 : index
    %3 = vector.load %arg3[%c0_3, %c0_4] : memref<1x64xf32, #tpu.memory_space<vmem>>, vector<1x64xf32>
    %4 = vector.broadcast %3 : vector<1x64xf32> to vector<8x64xf32>
    %5 = arith.addf %2, %4 : vector<8x64xf32>
    %6 = arith.mulf %5, %5 : vector<8x64xf32>
    %7 = arith.mulf %5, %6 : vector<8x64xf32>
    %cst_5 = arith.constant 4.471500e-02 : f32
    %8 = vector.broadcast %cst_5 : f32 to vector<8x64xf32>
    %9 = arith.mulf %8, %7 : vector<8x64xf32>
    %10 = arith.addf %5, %9 : vector<8x64xf32>
    %cst_6 = arith.constant 0.797884583 : f32
    %11 = vector.broadcast %cst_6 : f32 to vector<8x64xf32>
    %12 = arith.mulf %11, %10 : vector<8x64xf32>
    %13 = math.tanh %12 : vector<8x64xf32>
    %cst_7 = arith.constant 1.000000e+00 : f32
    %14 = vector.broadcast %cst_7 : f32 to vector<8x64xf32>
    %15 = arith.addf %14, %13 : vector<8x64xf32>
    %cst_8 = arith.constant 5.000000e-01 : f32
    %16 = vector.broadcast %cst_8 : f32 to vector<8x64xf32>
    %17 = arith.mulf %16, %15 : vector<8x64xf32>
    %18 = arith.mulf %5, %17 : vector<8x64xf32>
    %19 = arith.truncf %18 : vector<8x64xf32> to vector<8x64xbf16>
    %c0_9 = arith.constant 0 : index
    %c0_10 = arith.constant 0 : index
    %20 = vector.load %arg4[%c0_9, %c0_10] : memref<64x32xbf16, #tpu.memory_space<vmem>>, vector<64x32xbf16>
    %cst_11 = arith.constant dense<0.000000e+00> : vector<8x32xf32>
    %21 = tpu.matmul %19, %20, %cst_11 {dimension_numbers = #tpu.dot_dimension_numbers<[1], [0], [0], [1], [0, 0, 1, 1], [], []>} : vector<8x64xbf16>, vector<64x32xbf16>, vector<8x32xf32> -> vector<8x32xf32>
    %c0_12 = arith.constant 0 : index
    %c0_13 = arith.constant 0 : index
    %22 = vector.load %arg5[%c0_12, %c0_13] : memref<1x32xf32, #tpu.memory_space<vmem>>, vector<1x32xf32>
    %23 = vector.broadcast %22 : vector<1x32xf32> to vector<8x32xf32>
    %24 = arith.addf %21, %23 : vector<8x32xf32>
    %c0_14 = arith.constant 0 : index
    %c0_15 = arith.constant 0 : index
    %25 = vector.load %arg6[%c0_14, %c0_15] : memref<8x32xf32, #tpu.memory_space<vmem>>, vector<8x32xf32>
    tpu.vector_store %arg6[%c0_14, %c0_15], %24 {strides = array<i32>} : memref<8x32xf32, #tpu.memory_space<vmem>>, vector<8x32xf32>,
    return
  }
  func.func @transform_0(%arg0: i32) -> (i32, i32) {
    %c0_i32 = arith.constant 0 : i32
    %c0_i32_0 = arith.constant 0 : i32
    return %arg0, %c0_i32 : i32, i32
  }
  func.func @transform_1(%arg0: i32) -> (i32, i32) {
    %c0_i32 = arith.constant 0 : i32
    %c0_i32_0 = arith.constant 0 : i32
    %c0_i32_1 = arith.constant 0 : i32
    return %c0_i32, %c0_i32_0 : i32, i32
  }
  func.func @transform_2(%arg0: i32) -> (i32, i32) {
    %c0_i32 = arith.constant 0 : i32
    %c0_i32_0 = arith.constant 0 : i32
    %c0_i32_1 = arith.constant 0 : i32
    return %c0_i32, %c0_i32_0 : i32, i32
  }
  func.func @transform_3(%arg0: i32) -> (i32, i32) {
    %c0_i32 = arith.constant 0 : i32
    %c0_i32_0 = arith.constant 0 : i32
    %c0_i32_1 = arith.constant 0 : i32
    return %c0_i32, %c0_i32_0 : i32, i32
  }
  func.func @transform_4(%arg0: i32) -> (i32, i32) {
    %c0_i32 = arith.constant 0 : i32
    %c0_i32_0 = arith.constant 0 : i32
    %c0_i32_1 = arith.constant 0 : i32
    return %c0_i32, %c0_i32_0 : i32, i32
  }
  func.func @transform_5(%arg0: i32) -> (i32, i32) {
    %c0_i32 = arith.constant 0 : i32
    %c0_i32_0 = arith.constant 0 : i32
    return %arg0, %c0_i32 : i32, i32
  }
}

</mosaic_0001>

<bundles_post_ra>
// kernel: tpu_custom_call.1
= control target key start
LH: loop header
LB: loop body
LE: loop exit
PB: predicated region body
PF: predicated region fallthrough
CT: control target
= control target key end

     0   :  { %10 = vsyncpa [#allocation3], 0  ;;  %s776_s0 = inlined_call_operand.vmem [shape: bf16[16,32], index: 0, kind: input, shape index: {}]   ;;  %s777_s1 = inlined_call_operand.vmem [shape: bf16[32,64], index: 1, kind: input, shape index: {}]   ;;  %s778_s2 = inlined_call_operand.vmem [shape: f32[1,64], index: 2, kind: input, shape index: {}]   ;;  %s779_s3 = inlined_call_operand.vmem [shape: bf16[64,32], index: 3, kind: input, shape index: {}]   ;;  %s780_s4 = inlined_call_operand.vmem [shape: f32[1,32], index: 4, kind: input, shape index: {}]   ;;  %s781_s5 = inlined_call_operand.hbm [shape: f32[16,32], index: 5, kind: output, shape index: {}]  }
   0x1   :  { %12 = vsyncpa [#allocation3 + $0x1], 0  ;;  %s650_s18 = smov 0   ;;  %s652_s19 = smov 0  }
   0x2   :  { %s654_s20 = smov 0   ;;  %s656_s21 = smov 0  }
   0x3 LB: > { %s671_s22 = sadd.s32 4294967295, %s615_s21   ;;  %s456_s23 = sadd.s32 4294967294, %s615_s21   ;;  %s615_s21 = sphi %s656_s21, %s787_s21   ;;  %s611_s20 = sphi %s654_s20, %s786_s20   ;;  %s607_s19 = sphi %s652_s19, %s785_s19   ;;  %s603_s18 = sphi %s650_s18, %s784_s18  }
   0x4   : > { %s675_s24 = sadd.s32 1, %s615_s21   ;;  %s135_s25 = sadd.s32 1, %s611_s20 }
   0x5   : > { %s132_s26 = ssub.s32 %s615_s21, %s675_s24  ;;  %p145_p0 = scmp.ne.s32.totalorder %s611_s20, %s607_s19 }
   0x6   : > { %p133_p1 = scmp.eq.s32.totalorder %s132_s26, 0  ;;  %p146_p2 = scmp.eq.s32.totalorder %s671_s22, 1 }
   0x7   : > { %p151_p3 = scmp.ne.s32.totalorder %s607_s19, %s603_s18  ;;  %p152_p4 = scmp.eq.s32.totalorder %s456_s23, 1 }
   0x8   : > { %s686_s27 = scalar_select %p133_p1, %s611_s20, %s135_s25  }
   0x9   : > { %p688_p5 = por %p146_p2, %p145_p0  ;;  %p692_p6 = por %p152_p4, %p151_p3 }
   0xa   : > { %p459_p7 = scmp.ge.s32.totalorder %s615_s21, 1  ;;  %p189_p8 = scmp.lt.s32.totalorder %s615_s21, 3 }
   0xc   : > { %p190_p9 = pnand %p459_p7, %p189_p8 }
   0xd   : > { %v545_v0 = vld [vmem:[%s777_s1] sm:$0xff] (!%p190_p9)   ;;  %v617_v1 = vmov (!%p190_p9), 0.0   ;;  %v546_v2 = vld [vmem:[%s777_s1 + $0x8] sm:$0xff] (!%p190_p9)   ;;  %vm618_vm0 = vmmov (!%p190_p9), 0   ;;  %p216_p10 = scmp.lt.s32.totalorder (!%p190_p9), %s671_s22, 1  ;;  %vm245_vm1 = vcmask (!%p190_p9), 261120  }
   0xe   : > { %193 = sbr.rel (%p190_p9) target bundleno = 497 (0x1f1), region = 40  ;;  %484 = vmatprep.subr.bf16.mxu0 (!%p190_p9), %v617_v1  ;;  %492 = vmatprep.subr.bf16.mxu1 (!%p190_p9), %v617_v1  ;;  %v547_v4 = vld [vmem:[%s779_s3] sm:$0xff] (!%p190_p9)   ;;  %v548_v5 = vld [vmem:[%s779_s3 + $0x8] sm:$0xff] (!%p190_p9)   ;;  %v549_v6 = vld [vmem:[%s779_s3 + $0x10] sm:$0xff] (!%p190_p9)   ;;  %vm338_vm2 = vcmask (!%p190_p9), 523264   ;;  %s213_s8 = sand.u32 (!%p190_p9), 1, %s607_s19  }
   0xf   : > { %485 = vmatpush3.bf16.msra.mxu0 (!%p190_p9), %v545_v0  ;;  %488 = vmatprep.mubr.msk.bf16.mxu0 (!%p190_p9), %vm618_vm0, %v617_v1  ;;  %v550_v7 = vld [vmem:[%s779_s3 + $0x18] sm:$0xff] (!%p190_p9)   ;;  %v462_v8 = vld [vmem:[%s778_s2] ss:$0 sm:$0xff] (!%p190_p9)  ;;  %s473_s12 = sshll.u32 (!%p190_p9), %s671_s22, 7  ;;  %s619_s25 = smov (!%p190_p9), [#allocation2]  }
  0x10   : > { %486 = vmatprep.subr.bf16.mxu0 (!%p190_p9), %v617_v1  ;;  %500 = vmatprep.mubr.msk.bf16.mxu1 (!%p190_p9), %vm618_vm0, %v617_v1  ;;  %v466_v24 = vld [vmem:[%s780_s4] ss:$0 sm:$0xff] (!%p190_p9)  ;;  %s733_s17 = scalar_lea.hbm (!%p190_p9), %s781_s5, %s473_s12  ;;  %s557_s26 = sshll.u32 (!%p190_p9), %s619_s25, 4  ;;  %s558_s26 = int_to_ptr.vmem [resolvable:$false] %s557_s26 }
  0x11   : > { %493 = vmatpush3.bf16.msra.mxu1 (!%p190_p9), %v547_v4  ;;  %s559_s30 = scalar_lea.vmem (!%p190_p9), %s558_s26, 256 }
  0x12   : > { %494 = vmatprep.subr.bf16.mxu1 (!%p190_p9), %v617_v1 }
  0x13   : > { %487 = vmatpush3.bf16.msra.mxu0 (!%p190_p9), %v546_v2 }
  0x15   : > { %s217_s9 = scalar_select %p216_p10, %s671_s22, 1  ;;  %495 = vmatpush3.bf16.msra.mxu1 %v548_v5 }
  0x16   : > { %496 = vmatprep.subr.bf16.mxu1 %v617_v1  ;;  %s384_s22 = scalar_lea.sflag [#allocation3], %s213_s8 }
  0x17   : > { %s461_s10 = sshll.u32 %s217_s9, 2  ;;  %s460_s9 = sshll.u32 %s213_s8, 3 }
  0x18   : > { %s219_s13 = scalar_lea.vmem %s776_s0, %s461_s10 }
  0x19   : > { %v221_v3 = vld [vmem:[%s219_s13] sm:$0xf]  ;;  %497 = vmatpush3.bf16.msra.mxu1 %v549_v6  ;;  %s215_s13 = scalar_lea.vmem [#allocation2], %s460_s9 }
  0x1a   : > { %489 = vmatmul.mubr.msk.bf16.vlgmr.msra.gmra.mrb[0].mxu0 %vm245_vm1, %v221_v3  ;;  %498 = vmatprep.subr.bf16.mxu1 %v617_v1  ;;  %s397_s14 = sshll.u32 %s215_s13, 4  ;;  %s735_s14 = int_to_ptr.vmem [resolvable:$true] %s397_s14 }
  0x1b   : > { %s553_s23 = scalar_lea.vmem %s735_s14, 128  ;;  %p560_p0 = scmp.lt.s32.totalorder %s735_s14, %s558_s26 }
  0x1c   : > { %p554_p11 = scmp.ne.s32.totalorder %s735_s14, %s553_s23  ;;  %p561_p1 = scmp.lt.s32.totalorder %s559_s30, %s553_s23 }
  0x1d   : > { %499 = vmatpush3.bf16.msra.mxu1 %v550_v7 }
  0x1e   : > { %p555_p12 = pnand %p554_p11, %p688_p5  ;;  %p562_p2 = por %p561_p1, %p560_p0 }
  0x20   : > { %p556_p13 = pneg %p555_p12 }
  0x22   : > { %p563_p3 = pnand %p562_p2, %p556_p13 }
  0xed   : > { %v283_v9 = vpop.f32.mrb[0].mxu0 }
  0xee   : > { %v284_v10 = vadd.f32 %v462_v8, %v283_v9  ;;  %v490_v11 = vpop.f32.mrb[1].mxu0 }
  0xef   : > { %v286_v12 = vpop.f32.mrb[2].mxu0 }
  0xf0   : > { %v289_v13 = vmul.f32 %v284_v10, %v284_v10  ;;  %v491_v14 = vpop.f32.mrb[3].mxu0 }
  0xf2   : > { %v290_v15 = vmul.f32 %v289_v13, %v284_v10 }
  0xf4   : > { %v291_v16 = vmul.f32 0.044715, %v290_v15 }
  0xf6   : > { %v292_v17 = vadd.f32 %v291_v16, %v284_v10 }
  0xf8   : > { %v293_v18 = vmul.f32 0.7978846, %v292_v17 }
  0xfa   : > { %551 = vtanh.f32 %v293_v18 }
 0x104   : > { %v552_v19 = vpop.eup %551 }
 0x105   : > { %v295_v20 = vadd.f32 1.0, %v552_v19 }
 0x107   : > { %v296_v21 = vmul.f32 0.5, %v295_v20 }
 0x109   : > { %v297_v22 = vmul.f32 %v296_v21, %v284_v10 }
 0x10b   : > { %v298_v23 = vpack.c.bf16 %v297_v22, %v297_v22 }
 0x10d   : > { %501 = vmatmul.mubr.msk.bf16.vlgmr.msra.gmra.mrb[0].mxu1 %vm338_vm2, %v298_v23 }
 0x1e0   : > { %v376_v25 = vpop.f32.mrb[0].mxu1 }
 0x1e1   : > { %v377_v26 = vadd.f32 %v466_v24, %v376_v25  ;;  %v502_v27 = vpop.f32.mrb[1].mxu1 }
 0x1e2   : > { %v379_v28 = vpop.f32.mrb[2].mxu1 }
 0x1e3   : > { %v503_v29 = vpop.f32.mrb[3].mxu1  ;;  %382 = vst.msk [vmem:[%s215_s13] sm:$0xff] %vm245_vm1, %v377_v26 }
 0x1e4   : > { %566 = shalt.err (!%p563_p3)
}
 0x1e5   : > { %s567_s6 = scalar_lea.hbm %s733_s17, 128  ;;  %s571_s9 = scalar_lea.hbm %s781_s5, 256 }
 0x1e6   : > { %p568_p4 = scmp.ne.s32.totalorder %s733_s17, %s567_s6  ;;  %p572_p9 = scmp.lt.u32.totalorder %s733_s17, %s781_s5 }
 0x1e7   : > { %p573_p10 = scmp.lt.u32.totalorder %s571_s9, %s567_s6  ;;  %p575_p12 = scmp.lt.u32.totalorder %s567_s6, %s733_s17 }
 0x1e8   : > { %p569_p7 = pnand %p568_p4, %p688_p5 }
 0x1e9   : > { %p574_p11 = por %p573_p10, %p572_p9 }
 0x1ea   : > { %p570_p8 = pneg %p569_p7 }
 0x1eb   : > { %p576_p13 = por %p575_p12, %p574_p11 }
 0x1ed   : > { %p577_p0 = pnand %p576_p13, %p570_p8 }
 0x1ef   : > { %580 = shalt.err (!%p577_p0)
}
 0x1f0   : > { %504 = dma.vmem_to_hbm [thread:$0]  (%p688_p5), %s735_s14, 128, %s733_s17, %s384_s22  }
 0x1f1 PF: > { %p510_p1 = scmp.ge.s32.totalorder %s615_s21, 2  ;;  %s409_s12 = sand.u32 1, %s603_s18  }
 0x1f2   : > { %s410_s13 = scalar_lea.sflag [#allocation3], %s409_s12 }
 0x1f3   : > { %p507_p2 = pnand %p510_p1, %p692_p6 }
 0x1f5   : > { %598 = dma.done.wait (!%p507_p2), %s410_s13, 128  }
 0x1f6   : > { %600 = vsyncadd (!%p507_p2), %s410_s13, 4294967168  ;;  %p15_p3 = scmp.ge.s32.totalorder %s675_s24, 4   ;;  %s784_s18 = smov %s607_s19 }
 0x1f7   : > { %s785_s19 = smov %s611_s20  ;;  %s786_s20 = smov %s686_s27 }
 0x1f8   : > { %s787_s21 = smov %s675_s24  ;;  %17 = sbr.rel (!%p15_p3) target bundleno = 3 (0x3), region = 75 }
 0x1ff   :  { %415 = vsyncpa [#allocation3], 1 }
 0x200   :  { %417 = vsyncpa [#allocation3 + $0x1], 1 }

</bundles_post_ra>
